<compile_context>
chip_gen: v6e
topology: v6e:2x2x1
jax: 0.10.0
libtpu: 0.0.40
codegen_flags: <defaults>
</compile_context>

<pallas_src>
import functools

import jax
import jax.numpy as jnp
from jax.experimental import pallas as pl
from jax.experimental.pallas import tpu as pltpu

_LANE = 128
_W_TILE_ROWS = 4096     # (4096,128) f32 = 2 MiB per weight stream per step
_E_TILE_ROWS = 512      # (512,128)  f32 = 256 KiB per error stream per step
_ACC_ROWS = 64          # partial-sum accumulator block (64,128) = 8 vregs
_NUM_SLICES = 2         # leading "parallel" grid axis (dual-TC on v7x)


def _round_up(x, m):
    return (x + m - 1) // m * m


def _stream_tiling(rows, cap):
    """Per-slice row tile (multiple of _ACC_ROWS, <= cap) and padded total row
    count (multiple of _NUM_SLICES * tile).  Fixed point: feeding the padded
    row count back in returns the same tile and requires no further padding,
    so helper-padded inputs incur no per-call pad copy inside the jit."""
    per_slice = -(-rows // _NUM_SLICES)
    tile = min(cap, _round_up(per_slice, _ACC_ROWS))
    return _round_up(rows, _NUM_SLICES * tile), tile


# ----------------------------- Pallas kernel -------------------------------- #

def _lrf_partials_kernel(theta_ref, tstar_ref, eo_ref, et_ref,
                         wsum_ref, esum_ref, *, nwb, neb, wt, et):
    """Per-slice partial sums of (theta-theta*)^2 and (output-target)^2.

    Outputs are (ACC_ROWS, LANE) blocks indexed only by the parallel slice
    axis, so they stay resident across the 'arbitrary' axis and act as
    accumulators; all cross-lane reduction happens in the JAX wrapper."""
    i = pl.program_id(1)

    @pl.when(i == 0)
    def _init():
        wsum_ref[...] = jnp.zeros_like(wsum_ref)
        esum_ref[...] = jnp.zeros_like(esum_ref)

    # ||theta - theta*||^2 partials: VPU-only elementwise accumulate into a
    # (64,128) block -> wt/64 dependent adds of 8 independent vregs each.
    @pl.when(i < nwb)
    def _weights():
        d = theta_ref[...] - tstar_ref[...]
        wsum_ref[...] += jnp.sum(
            (d * d).reshape(wt // _ACC_ROWS, _ACC_ROWS, _LANE), axis=0)

    # sum((output - target)^2) partials on the lane-dense error slab.
    @pl.when(i < neb)
    def _errors():
        e = eo_ref[...] - et_ref[...]
        esum_ref[...] += jnp.sum(
            (e * e).reshape(et // _ACC_ROWS, _ACC_ROWS, _LANE), axis=0)


# ------------------------------ Wrappers ------------------------------------ #

def vectorize_parameters_padded(params):
    """Mirror LRFLoss.vectorize_parameters + concat_vectors, then zero-pad and
    reshape ONCE (per parameter snapshot) to a lane-dense, tile-aligned
    (rows, 128) f32 matrix.  Zero padding contributes nothing to the norm.
    Returns (matrix, num_weight_params)."""
    flats = [jnp.asarray(p, jnp.float32).reshape(-1) for p in params
             if jnp.ndim(p) > 1]
    if not flats:
        # 'if not self.theta: return loss' -> zero diff => reg == 0.
        rows_pad, _ = _stream_tiling(1, _W_TILE_ROWS)
        return jnp.zeros((rows_pad, _LANE), jnp.float32), 0
    v = jnp.concatenate(flats)
    n = v.shape[0]
    rows = -(-n // _LANE)
    rows_pad, _ = _stream_tiling(rows, _W_TILE_ROWS)
    v = jnp.pad(v, (0, rows_pad * _LANE - n))
    return v.reshape(rows_pad, _LANE), len(flats)


def _resolve_alpha(num_weight_params, alpha):
    """LRFLoss alpha rule: 1/co with co = 1/alpha, or max(len(theta)-10, 1)."""
    if alpha is None:
        co = max(num_weight_params - 10, 1)
    else:
        co = 1.0 / alpha
    return 1.0 / co


@jax.jit
def _lrf_loss_jit(output, target, theta_mat, theta_star_mat, alpha_eff):
    # ---- error stream: flatten + zero-pad to a lane-dense (rowsE,128) slab --
    eo = jnp.asarray(output, jnp.float32).reshape(-1)
    et = jnp.asarray(target, jnp.float32).reshape(-1)
    assert eo.shape == et.shape, (eo.shape, et.shape)
    n_err = eo.shape[0]
    rows_e = -(-n_err // _LANE)
    rows_e_pad, et_tile = _stream_tiling(rows_e, _E_TILE_ROWS)
    pad_e = rows_e_pad * _LANE - n_err
    eo2 = jnp.pad(eo, (0, pad_e)).reshape(rows_e_pad, _LANE)
    et2 = jnp.pad(et, (0, pad_e)).reshape(rows_e_pad, _LANE)

    # ---- weight streams: pad to tile alignment only if the caller didn't ----
    theta_mat = jnp.asarray(theta_mat, jnp.float32)
    theta_star_mat = jnp.asarray(theta_star_mat, jnp.float32)
    R, lanes = theta_mat.shape
    assert lanes == _LANE and theta_star_mat.shape == (R, _LANE), (
        theta_mat.shape, theta_star_mat.shape)
    r_pad, wt = _stream_tiling(R, _W_TILE_ROWS)
    if r_pad != R:   # zero rows contribute nothing to ||theta - theta*||
        theta_mat = jnp.pad(theta_mat, ((0, r_pad - R), (0, 0)))
        theta_star_mat = jnp.pad(theta_star_mat, ((0, r_pad - R), (0, 0)))

    nwb = r_pad // (_NUM_SLICES * wt)            # weight blocks per slice
    neb = rows_e_pad // (_NUM_SLICES * et_tile)  # error  blocks per slice
    nsteps = max(nwb, neb)

    kernel = functools.partial(_lrf_partials_kernel,
                               nwb=nwb, neb=neb, wt=wt, et=et_tile)

    # Shorter stream clamps its block index -> revisited block, no extra DMA.
    def _slice_map(nb):
        if nb == nsteps:
            return lambda s, i: (s * nb + i, 0)
        return lambda s, i: (s * nb + jnp.minimum(i, nb - 1), 0)

    w_map = _slice_map(nwb)
    e_map = _slice_map(neb)

    bytes_accessed = 4 * (2 * r_pad * _LANE + 2 * rows_e_pad * _LANE
                          + 2 * _NUM_SLICES * _ACC_ROWS * _LANE)
    flops = 3 * r_pad * _LANE + 3 * rows_e_pad * _LANE

    w_part, e_part = pl.pallas_call(
        kernel,
        out_shape=(
            jax.ShapeDtypeStruct((_NUM_SLICES * _ACC_ROWS, _LANE), jnp.float32),
            jax.ShapeDtypeStruct((_NUM_SLICES * _ACC_ROWS, _LANE), jnp.float32),
        ),
        grid=(_NUM_SLICES, nsteps),
        in_specs=[
            pl.BlockSpec((wt, _LANE), w_map),
            pl.BlockSpec((wt, _LANE), w_map),
            pl.BlockSpec((et_tile, _LANE), e_map),
            pl.BlockSpec((et_tile, _LANE), e_map),
        ],
        out_specs=(
            pl.BlockSpec((_ACC_ROWS, _LANE), lambda s, i: (s, 0)),
            pl.BlockSpec((_ACC_ROWS, _LANE), lambda s, i: (s, 0)),
        ),
        compiler_params=pltpu.CompilerParams(
            dimension_semantics=("parallel", "arbitrary"),
            vmem_limit_bytes=32 * 1024 * 1024),
        cost_estimate=pl.CostEstimate(flops=flops, transcendentals=0,
                                      bytes_accessed=bytes_accessed),
    )(theta_mat, theta_star_mat, eo2, et2)

    # Finalize: tiny XLA reductions over two (2*64, 128) partial slabs.
    reg = jnp.sqrt(jnp.sum(w_part))
    mse = jnp.sum(e_part) / jnp.float32(n_err)
    return mse + jnp.asarray(alpha_eff, jnp.float32) * reg


def lrf_loss_forward(output, target, theta_mat, theta_star_mat, *,
                     alpha=None, num_weight_params=0):
    """LRFLoss.forward: MSE(output, target) + alpha * ||theta - theta*||_2."""
    alpha_eff = _resolve_alpha(num_weight_params, alpha)
    return _lrf_loss_jit(output, target, theta_mat, theta_star_mat,
                         jnp.float32(alpha_eff))


# ------------------------------ Driver --------------------------------------- #

if __name__ == "__main__":
    key = jax.random.PRNGKey(0)
    ks = jax.random.split(key, 8)

    # ---- Case 1: small net Linear(16->32), Linear(32->10); explicit alpha ----
    W1_0 = 0.1 * jax.random.normal(ks[0], (32, 16), jnp.float32)
    W2_0 = 0.1 * jax.random.normal(ks[1], (10, 32), jnp.float32)
    b1 = jnp.zeros((32,), jnp.float32)
    b2 = jnp.zeros((10,), jnp.float32)
    init_params = [W1_0, b1, W2_0, b2]                      # theta* cached at init
    W1 = W1_0 + 0.01 * jax.random.normal(ks[2], W1_0.shape, jnp.float32)
    W2 = W2_0 + 0.01 * jax.random.normal(ks[3], W2_0.shape, jnp.float32)
    cur_params = [W1, b1, W2, b2]                           # current theta

    theta_star_mat, n_w = vectorize_parameters_padded(init_params)
    theta_mat, _ = vectorize_parameters_padded(cur_params)

    output = jax.random.normal(ks[4], (8, 10), jnp.float32)
    target = jax.random.normal(ks[5], (8, 10), jnp.float32)

    alpha = 0.0005
    res = lrf_loss_forward(output, target, theta_mat, theta_star_mat,
                           alpha=alpha, num_weight_params=n_w)
    res = jax.block_until_ready(res)

    d = jnp.concatenate([(W1 - W1_0).reshape(-1), (W2 - W2_0).reshape(-1)])
    ref = jnp.mean((output - target) ** 2) + alpha * jnp.sqrt(jnp.sum(d * d))
    assert abs(float(res) - float(ref)) < 1e-3 * max(1.0, abs(float(ref))), \
        (float(res), float(ref))

    # ---- Case 1b: non-tile-aligned weight matrices exercise the in-jit pad ----
    rows_used = -(-(32 * 16 + 10 * 32) // _LANE)            # 7 rows
    res_1b = lrf_loss_forward(output, target,
                              theta_mat[:rows_used], theta_star_mat[:rows_used],
                              alpha=alpha, num_weight_params=n_w)
    res_1b = jax.block_until_ready(res_1b)
    assert abs(float(res_1b) - float(ref)) < 1e-3 * max(1.0, abs(float(ref))), \
        (float(res_1b), float(ref))

    # ---- Case 2: bigger weights + batch (multi-step grid, clamped weight
    #      stream, dual-slice split), alpha=None path ----
    W0 = 0.05 * jax.random.normal(ks[6], (512, 512), jnp.float32)
    Wc = W0 + 0.01 * jax.random.normal(ks[7], W0.shape, jnp.float32)
    bz = jnp.zeros((512,), jnp.float32)
    ts_mat2, n_w2 = vectorize_parameters_padded([W0, bz])
    th_mat2, _ = vectorize_parameters_padded([Wc, bz])
    out_b = jax.random.normal(jax.random.PRNGKey(1), (512, 300), jnp.float32)
    tgt_b = jax.random.normal(jax.random.PRNGKey(2), (512, 300), jnp.float32)

    res2 = lrf_loss_forward(out_b, tgt_b, th_mat2, ts_mat2,
                            alpha=None, num_weight_params=n_w2)
    res2 = jax.block_until_ready(res2)

    a2 = 1.0 / max(n_w2 - 10, 1)
    ref2 = jnp.mean((out_b - tgt_b) ** 2) + a2 * jnp.linalg.norm((Wc - W0).reshape(-1))
    assert abs(float(res2) - float(ref2)) < 1e-3 * max(1.0, abs(float(ref2))), \
        (float(res2), float(ref2))

    print("KERNEL_OK")
</pallas_src>

<mosaic_0001>
module attributes {stable_mosaic.version = 11 : i64} {
  func.func @_lrf_partials_kernel(%arg0: i32, %arg1: i32, %arg2: memref<64x128xf32, #tpu.memory_space<vmem>>, %arg3: memref<64x128xf32, #tpu.memory_space<vmem>>, %arg4: memref<64x128xf32, #tpu.memory_space<vmem>>, %arg5: memref<64x128xf32, #tpu.memory_space<vmem>>, %arg6: memref<64x128xf32, #tpu.memory_space<vmem>>, %arg7: memref<64x128xf32, #tpu.memory_space<vmem>>) attributes {dimension_semantics = [#tpu.dimension_semantics<parallel>, #tpu.dimension_semantics<arbitrary>], iteration_bounds = array<i64: 2, 1>, scalar_prefetch = 0 : i64, scratch_operands = 0 : i64, tpu.core_type = #tpu.core_type<tc>, window_params = [{transform_indices = @transform_0, window_bounds = array<i64: 64, 128>}, {transform_indices = @transform_1, window_bounds = array<i64: 64, 128>}, {transform_indices = @transform_2, window_bounds = array<i64: 64, 128>}, {transform_indices = @transform_3, window_bounds = array<i64: 64, 128>}, {transform_indices = @transform_4, window_bounds = array<i64: 64, 128>}, {transform_indices = @transform_5, window_bounds = array<i64: 64, 128>}]} {
    %c0_i32 = arith.constant 0 : i32
    %0 = arith.cmpi eq, %arg1, %c0_i32 : i32
    %1 = arith.extui %0 : i1 to i32
    %c0_i32_0 = arith.constant 0 : i32
    %2 = arith.cmpi ne, %1, %c0_i32_0 : i32
    scf.if %2 {
      %cst = arith.constant 0.000000e+00 : f32
      %9 = vector.broadcast %cst : f32 to vector<64x128xf32>
      %c0 = arith.constant 0 : index
      %c0_4 = arith.constant 0 : index
      %10 = vector.load %arg6[%c0, %c0_4] : memref<64x128xf32, #tpu.memory_space<vmem>>, vector<64x128xf32>
      tpu.vector_store %arg6[%c0, %c0_4], %9 {strides = array<i32>} : memref<64x128xf32, #tpu.memory_space<vmem>>, vector<64x128xf32>,
      %cst_5 = arith.constant 0.000000e+00 : f32
      %11 = vector.broadcast %cst_5 : f32 to vector<64x128xf32>
      %c0_6 = arith.constant 0 : index
      %c0_7 = arith.constant 0 : index
      %12 = vector.load %arg7[%c0_6, %c0_7] : memref<64x128xf32, #tpu.memory_space<vmem>>, vector<64x128xf32>
      tpu.vector_store %arg7[%c0_6, %c0_7], %11 {strides = array<i32>} : memref<64x128xf32, #tpu.memory_space<vmem>>, vector<64x128xf32>,
    } else {
    }
    %c1_i32 = arith.constant 1 : i32
    %3 = arith.cmpi slt, %arg1, %c1_i32 : i32
    %4 = arith.extui %3 : i1 to i32
    %c0_i32_1 = arith.constant 0 : i32
    %5 = arith.cmpi ne, %4, %c0_i32_1 : i32
    scf.if %5 {
      %c0 = arith.constant 0 : index
      %c0_4 = arith.constant 0 : index
      %9 = vector.load %arg2[%c0, %c0_4] : memref<64x128xf32, #tpu.memory_space<vmem>>, vector<64x128xf32>
      %c0_5 = arith.constant 0 : index
      %c0_6 = arith.constant 0 : index
      %10 = vector.load %arg3[%c0_5, %c0_6] : memref<64x128xf32, #tpu.memory_space<vmem>>, vector<64x128xf32>
      %11 = arith.subf %9, %10 : vector<64x128xf32>
      %c0_7 = arith.constant 0 : index
      %c0_8 = arith.constant 0 : index
      %12 = vector.load %arg6[%c0_7, %c0_8] : memref<64x128xf32, #tpu.memory_space<vmem>>, vector<64x128xf32>
      %13 = arith.mulf %11, %11 : vector<64x128xf32>
      %14 = vector.shape_cast %13 : vector<64x128xf32> to vector<1x64x128xf32>
      %cst = arith.constant dense<0.000000e+00> : vector<64x128xf32>
      %15 = vector.multi_reduction <add>, %14, %cst [0] : vector<1x64x128xf32> to vector<64x128xf32>
      %16 = arith.addf %12, %15 : vector<64x128xf32>
      %c0_9 = arith.constant 0 : index
      %c0_10 = arith.constant 0 : index
      %17 = vector.load %arg6[%c0_9, %c0_10] : memref<64x128xf32, #tpu.memory_space<vmem>>, vector<64x128xf32>
      tpu.vector_store %arg6[%c0_9, %c0_10], %16 {strides = array<i32>} : memref<64x128xf32, #tpu.memory_space<vmem>>, vector<64x128xf32>,
    } else {
    }
    %c1_i32_2 = arith.constant 1 : i32
    %6 = arith.cmpi slt, %arg1, %c1_i32_2 : i32
    %7 = arith.extui %6 : i1 to i32
    %c0_i32_3 = arith.constant 0 : i32
    %8 = arith.cmpi ne, %7, %c0_i32_3 : i32
    scf.if %8 {
      %c0 = arith.constant 0 : index
      %c0_4 = arith.constant 0 : index
      %9 = vector.load %arg4[%c0, %c0_4] : memref<64x128xf32, #tpu.memory_space<vmem>>, vector<64x128xf32>
      %c0_5 = arith.constant 0 : index
      %c0_6 = arith.constant 0 : index
      %10 = vector.load %arg5[%c0_5, %c0_6] : memref<64x128xf32, #tpu.memory_space<vmem>>, vector<64x128xf32>
      %11 = arith.subf %9, %10 : vector<64x128xf32>
      %c0_7 = arith.constant 0 : index
      %c0_8 = arith.constant 0 : index
      %12 = vector.load %arg7[%c0_7, %c0_8] : memref<64x128xf32, #tpu.memory_space<vmem>>, vector<64x128xf32>
      %13 = arith.mulf %11, %11 : vector<64x128xf32>
      %14 = vector.shape_cast %13 : vector<64x128xf32> to vector<1x64x128xf32>
      %cst = arith.constant dense<0.000000e+00> : vector<64x128xf32>
      %15 = vector.multi_reduction <add>, %14, %cst [0] : vector<1x64x128xf32> to vector<64x128xf32>
      %16 = arith.addf %12, %15 : vector<64x128xf32>
      %c0_9 = arith.constant 0 : index
      %c0_10 = arith.constant 0 : index
      %17 = vector.load %arg7[%c0_9, %c0_10] : memref<64x128xf32, #tpu.memory_space<vmem>>, vector<64x128xf32>
      tpu.vector_store %arg7[%c0_9, %c0_10], %16 {strides = array<i32>} : memref<64x128xf32, #tpu.memory_space<vmem>>, vector<64x128xf32>,
    } else {
    }
    return
  }
  func.func @transform_0(%arg0: i32, %arg1: i32) -> (i32, i32) {
    %c1_i32 = arith.constant 1 : i32
    %0 = arith.muli %arg0, %c1_i32 : i32
    %1 = arith.addi %0, %arg1 : i32
    %c0_i32 = arith.constant 0 : i32
    %c0_i32_0 = arith.constant 0 : i32
    return %1, %c0_i32 : i32, i32
  }
  func.func @transform_1(%arg0: i32, %arg1: i32) -> (i32, i32) {
    %c1_i32 = arith.constant 1 : i32
    %0 = arith.muli %arg0, %c1_i32 : i32
    %1 = arith.addi %0, %arg1 : i32
    %c0_i32 = arith.constant 0 : i32
    %c0_i32_0 = arith.constant 0 : i32
    return %1, %c0_i32 : i32, i32
  }
  func.func @transform_2(%arg0: i32, %arg1: i32) -> (i32, i32) {
    %c1_i32 = arith.constant 1 : i32
    %0 = arith.muli %arg0, %c1_i32 : i32
    %1 = arith.addi %0, %arg1 : i32
    %c0_i32 = arith.constant 0 : i32
    %c0_i32_0 = arith.constant 0 : i32
    return %1, %c0_i32 : i32, i32
  }
  func.func @transform_3(%arg0: i32, %arg1: i32) -> (i32, i32) {
    %c1_i32 = arith.constant 1 : i32
    %0 = arith.muli %arg0, %c1_i32 : i32
    %1 = arith.addi %0, %arg1 : i32
    %c0_i32 = arith.constant 0 : i32
    %c0_i32_0 = arith.constant 0 : i32
    return %1, %c0_i32 : i32, i32
  }
  func.func @transform_4(%arg0: i32, %arg1: i32) -> (i32, i32) {
    %c0_i32 = arith.constant 0 : i32
    %c0_i32_0 = arith.constant 0 : i32
    return %arg0, %c0_i32 : i32, i32
  }
  func.func @transform_5(%arg0: i32, %arg1: i32) -> (i32, i32) {
    %c0_i32 = arith.constant 0 : i32
    %c0_i32_0 = arith.constant 0 : i32
    return %arg0, %c0_i32 : i32, i32
  }
}

</mosaic_0001>

<bundles_post_ra>
// kernel: _lrf_loss_jit.1
= control target key start
LH: loop header
LB: loop body
LE: loop exit
PB: predicated region body
PF: predicated region fallthrough
CT: control target
= control target key end

     0   :  { %s733_s18 = smov 0   ;;  %s735_s19 = smov 0   ;;  %s816_s0 = inlined_call_operand.vmem [shape: f32[128,128], index: 0, kind: input, shape index: {}]   ;;  %s817_s1 = inlined_call_operand.vmem [shape: f32[128,128], index: 1, kind: input, shape index: {}]   ;;  %s818_s2 = inlined_call_operand.vmem [shape: f32[128,128], index: 2, kind: input, shape index: {}]   ;;  %s819_s3 = inlined_call_operand.vmem [shape: f32[128,128], index: 3, kind: input, shape index: {}]   ;;  %s820_s4 = inlined_call_operand.vmem [shape: f32[128,128], index: 4, kind: output, shape index: {0}]   ;;  %s821_s5 = inlined_call_operand.vmem [shape: f32[128,128], index: 5, kind: output, shape index: {1}]  }
   0x1   :  { %s737_s20 = smov 0  }
   0x2 LB: > { %s28_s21 = sadd.s32 1, %s697_s19  ;;  %p639_p0 = scmp.ge.s32.totalorder %s701_s20, 1  ;;  %s701_s20 = sphi %s737_s20, %s16_s20   ;;  %s697_s19 = sphi %s735_s19, %s823_s19   ;;  %s693_s18 = sphi %s733_s18, %s822_s18  }
   0x3   : > { %p30_p1 = scmp.ge.s32.totalorder %s28_s21, 2  ;;  %p252_p2 = scmp.lt.s32.totalorder %s701_s20, 3 }
   0x5   : > { %s825_s21 = smov (%p30_p1, %s28_s21), 0  ;;  %p253_p3 = pnand %p639_p0, %p252_p2 }
   0x6   : > { %s640_s22 = sshll.u32 (!%p253_p3), %s693_s18, 3 }
   0x7   : > { %256 = sbr.rel (%p253_p3) target bundleno = 32 (0x20), region = 36  ;;  %p306_p4 = scmp.lt.s32.totalorder (!%p253_p3), %s640_s22, 15 }
   0xc   : > { %s827_s22 = smov (!%p306_p4, %s640_s22), 15 }
   0xd   : > { %s751_s23 = sshll.u32 %s827_s22, 3 }
   0xe   : > { %s309_s26 = scalar_lea.vmem %s816_s0, %s751_s23  ;;  %s317_s29 = scalar_lea.vmem %s817_s1, %s751_s23 }
   0xf   : > { %v372_v0 = vld [vmem:[%s309_s26] sm:$0xff]  ;;  %v373_v2 = vld [vmem:[%s309_s26 + $0x8] sm:$0xff]  ;;  %v374_v5 = vld [vmem:[%s309_s26 + $0x10] sm:$0xff]  ;;  %s765_s7 = scalar_lea.vmem %s818_s2, %s751_s23  ;;  %s771_s10 = scalar_lea.vmem %s819_s3, %s751_s23 }
  0x10   : > { %v380_v1 = vld [vmem:[%s317_s29] sm:$0xff]  ;;  %v381_v4 = vld [vmem:[%s317_s29 + $0x8] sm:$0xff]  ;;  %v382_v6 = vld [vmem:[%s317_s29 + $0x10] sm:$0xff]  ;;  %s777_s13 = scalar_lea.vmem %s820_s4, %s751_s23  ;;  %s346_s16 = scalar_lea.vmem %s821_s5, %s751_s23 }
  0x11   : > { %v388_v3 = vsub.f32 %v372_v0, %v380_v1  ;;  %v389_v7 = vsub.f32 %v373_v2, %v381_v4  ;;  %v390_v8 = vsub.f32 %v374_v5, %v382_v6  ;;  %v375_v9 = vld [vmem:[%s309_s26 + $0x18] sm:$0xff]  ;;  %v376_v11 = vld [vmem:[%s309_s26 + $0x20] sm:$0xff]  ;;  %v377_v15 = vld [vmem:[%s309_s26 + $0x28] sm:$0xff] }
  0x12   : > { %v383_v10 = vld [vmem:[%s317_s29 + $0x18] sm:$0xff]  ;;  %v384_v14 = vld [vmem:[%s317_s29 + $0x20] sm:$0xff]  ;;  %v385_v16 = vld [vmem:[%s317_s29 + $0x28] sm:$0xff] }
  0x13   : > { %v404_v12 = vmul.f32 %v388_v3, %v388_v3  ;;  %v391_v13 = vsub.f32 %v375_v9, %v383_v10  ;;  %v405_v17 = vmul.f32 %v389_v7, %v389_v7  ;;  %v406_v18 = vmul.f32 %v390_v8, %v390_v8  ;;  %v378_v21 = vld [vmem:[%s309_s26 + $0x30] sm:$0xff]  ;;  %v379_v23 = vld [vmem:[%s309_s26 + $0x38] sm:$0xff]  ;;  %v436_v27 = vld [vmem:[%s765_s7] sm:$0xff] }
  0x14   : > { %v392_v19 = vsub.f32 %v376_v11, %v384_v14  ;;  %v393_v20 = vsub.f32 %v377_v15, %v385_v16  ;;  %v386_v22 = vld [vmem:[%s317_s29 + $0x30] sm:$0xff]  ;;  %v387_v26 = vld [vmem:[%s317_s29 + $0x38] sm:$0xff]  ;;  %v444_v28 = vld [vmem:[%s771_s10] sm:$0xff] }
  0x15   : > { %v407_v24 = vmul.f32 %v391_v13, %v391_v13  ;;  %v394_v25 = vsub.f32 %v378_v21, %v386_v22  ;;  %v437_v31 = vld [vmem:[%s765_s7 + $0x8] sm:$0xff]  ;;  %v438_v33 = vld [vmem:[%s765_s7 + $0x10] sm:$0xff]  ;;  %428 = vst [vmem:[%s777_s13] sm:$0xff] %v404_v12  ;;  %v395_v35 = vsub.f32 %v379_v23, %v387_v26  ;;  %v452_v36 = vsub.f32 %v436_v27, %v444_v28  ;;  %v439_v38 = vld [vmem:[%s765_s7 + $0x18] sm:$0xff] }
  0x16   : > { %v408_v29 = vmul.f32 %v392_v19, %v392_v19  ;;  %v409_v30 = vmul.f32 %v393_v20, %v393_v20  ;;  %v445_v32 = vld [vmem:[%s771_s10 + $0x8] sm:$0xff]  ;;  %v446_v37 = vld [vmem:[%s771_s10 + $0x10] sm:$0xff]  ;;  %v447_v39 = vld [vmem:[%s771_s10 + $0x18] sm:$0xff]  ;;  %429 = vst [vmem:[%s777_s13 + $0x8] sm:$0xff] %v405_v17 }
  0x17   : > { %v410_v34 = vmul.f32 %v394_v25, %v394_v25  ;;  %430 = vst [vmem:[%s777_s13 + $0x10] sm:$0xff] %v406_v18  ;;  %v453_v40 = vsub.f32 %v437_v31, %v445_v32  ;;  %v454_v41 = vsub.f32 %v438_v33, %v446_v37  ;;  %v440_v42 = vld [vmem:[%s765_s7 + $0x20] sm:$0xff]  ;;  %v441_v44 = vld [vmem:[%s765_s7 + $0x28] sm:$0xff]  ;;  %431 = vst [vmem:[%s777_s13 + $0x18] sm:$0xff] %v407_v24 }
  0x18   : > { %v448_v43 = vld [vmem:[%s771_s10 + $0x20] sm:$0xff]  ;;  %v411_v45 = vmul.f32 %v395_v35, %v395_v35  ;;  %v468_v46 = vmul.f32 %v452_v36, %v452_v36  ;;  %v455_v47 = vsub.f32 %v439_v38, %v447_v39  ;;  %v449_v48 = vld [vmem:[%s771_s10 + $0x28] sm:$0xff]  ;;  %v442_v49 = vld [vmem:[%s765_s7 + $0x30] sm:$0xff]  ;;  %432 = vst [vmem:[%s777_s13 + $0x20] sm:$0xff] %v408_v29 }
  0x19   : > { %v450_v50 = vld [vmem:[%s771_s10 + $0x30] sm:$0xff]  ;;  %433 = vst [vmem:[%s777_s13 + $0x28] sm:$0xff] %v409_v30  ;;  %v469_v51 = vmul.f32 %v453_v40, %v453_v40  ;;  %v470_v52 = vmul.f32 %v454_v41, %v454_v41  ;;  %v456_v53 = vsub.f32 %v440_v42, %v448_v43  ;;  %v457_v54 = vsub.f32 %v441_v44, %v449_v48  ;;  %v443_v55 = vld [vmem:[%s765_s7 + $0x38] sm:$0xff] }
  0x1a   : > { %v451_v56 = vld [vmem:[%s771_s10 + $0x38] sm:$0xff]  ;;  %434 = vst [vmem:[%s777_s13 + $0x30] sm:$0xff] %v410_v34  ;;  %v471_v57 = vmul.f32 %v455_v47, %v455_v47  ;;  %v458_v58 = vsub.f32 %v442_v49, %v450_v50  ;;  %435 = vst [vmem:[%s777_s13 + $0x38] sm:$0xff] %v411_v45 }
  0x1b   : > { %v472_v59 = vmul.f32 %v456_v53, %v456_v53  ;;  %v473_v60 = vmul.f32 %v457_v54, %v457_v54  ;;  %492 = vst [vmem:[%s346_s16] sm:$0xff] %v468_v46  ;;  %v459_v62 = vsub.f32 %v443_v55, %v451_v56  ;;  %493 = vst [vmem:[%s346_s16 + $0x8] sm:$0xff] %v469_v51 }
  0x1c   : > { %v474_v61 = vmul.f32 %v458_v58, %v458_v58  ;;  %494 = vst [vmem:[%s346_s16 + $0x10] sm:$0xff] %v470_v52  ;;  %495 = vst [vmem:[%s346_s16 + $0x18] sm:$0xff] %v471_v57 }
  0x1d   : > { %v475_v63 = vmul.f32 %v459_v62, %v459_v62  ;;  %496 = vst [vmem:[%s346_s16 + $0x20] sm:$0xff] %v472_v59  ;;  %497 = vst [vmem:[%s346_s16 + $0x28] sm:$0xff] %v473_v60 }
  0x1e   : > { %498 = vst [vmem:[%s346_s16 + $0x30] sm:$0xff] %v474_v61 }
  0x1f   : > { %499 = vst [vmem:[%s346_s16 + $0x38] sm:$0xff] %v475_v63 }
  0x20 PF: > { %s16_s20 = sadd.s32 1, %s701_s20   ;;  %s822_s18 = smov %s697_s19 }
  0x21   : > { %p13_p5 = scmp.ge.s32.totalorder %s16_s20, 4   ;;  %s823_s19 = smov %s825_s21 }
  0x23   :  { %15 = sbr.rel (!%p13_p5) target bundleno = 2 (0x2), region = 95 }

</bundles_post_ra>
